<compile_context>
chip_gen: v6e
topology: v6e:2x2x1
jax: 0.10.0
libtpu: 0.0.40
codegen_flags: <defaults>
</compile_context>

<pallas_src>
import functools

import numpy as np
import jax
import jax.numpy as jnp
from jax import lax
from jax.experimental import pallas as pl
from jax.experimental.pallas import tpu as pltpu

_LN2 = 0.6931471805599453
_INV_LN2 = 1.4426950408889634
_EPS = 1e-8


# ---------------------------------------------------------------------------
# hybrid log/uniform fake quantization -- pure-JAX reference form.
# TODO(synk): fake_hybrid_quantize_per_tensor_affine is not included in the
# provided spec; this is a reconstruction of ahcptq's hybrid log/uniform
# quantizer (HLUQ) from the observer's parameterization
# (fp_min, scale_log, scale_uni, grid_rate), not the verbatim implementation.
# The Pallas kernel inlines an algebraically equivalent form (hoisted log,
# power-of-two via exponent bits) of this same function.
# ---------------------------------------------------------------------------
def _hybrid_fake_quant(x, fp_min, scale_log, scale_uni, n_log, n_uni):
    xs = jnp.maximum(x - fp_min, 0.0)
    # uniform region: (scale_log, scale_log + n_uni * scale_uni] above fp_min
    q_u = jnp.clip(jnp.round((xs - scale_log) / scale_uni), 0.0, n_uni)
    dq_u = scale_log + q_u * scale_uni
    # log2 region: [0, scale_log] above fp_min (fine resolution near fp_min)
    ratio = jnp.clip(xs, 1e-30, scale_log) / scale_log
    q_l = jnp.clip(jnp.round(-jnp.log(ratio) * _INV_LN2), 0.0, n_log - 1.0)
    dq_l = jnp.where(xs > 0.0, scale_log * jnp.exp(-q_l * _LN2), 0.0)
    return fp_min + jnp.where(xs > scale_log, dq_u, dq_l)


# ---------------------------------------------------------------------------
# Pallas kernel 1: global min / max (torch._aminmax equivalent)
# Per-step axis-0 reduce into (1, Din) accumulators; scalar finalize last step.
# ---------------------------------------------------------------------------
def _minmax_kernel(nvalid_ref, x_ref, min_ref, max_ref, mn_acc, mx_acc):
    i = pl.program_id(0)
    tn = x_ref.shape[0]

    @pl.when(i == 0)
    def _init():
        mn_acc[...] = jnp.full(mn_acc.shape, jnp.inf, jnp.float32)
        mx_acc[...] = jnp.full(mx_acc.shape, -jnp.inf, jnp.float32)

    x = x_ref[...]
    row_ids = i * tn + lax.broadcasted_iota(jnp.int32, (tn, 1), 0)
    valid = row_ids < nvalid_ref[0]
    # sublane (axis-0) reduce per step: no tile-sized vstores, small accumulators
    mn_acc[...] = jnp.minimum(
        mn_acc[...], jnp.min(jnp.where(valid, x, jnp.inf), axis=0, keepdims=True))
    mx_acc[...] = jnp.maximum(
        mx_acc[...], jnp.max(jnp.where(valid, x, -jnp.inf), axis=0, keepdims=True))

    @pl.when(i == pl.num_programs(0) - 1)
    def _finalize():
        min_ref[...] = jnp.min(mn_acc[...], keepdims=True)
        max_ref[...] = jnp.max(mx_acc[...], keepdims=True)


# ---------------------------------------------------------------------------
# Pallas kernel 2: K-candidate hybrid fake-quant + linear L2 loss, one x pass.
#   F.linear(xq, w, b) - F.linear(x, w, b) == (xq - x) @ w.T   (bias and the
#   shared x @ w.T term cancel exactly), so one bf16 MXU pass per candidate.
# ---------------------------------------------------------------------------
def _hybrid_loss_kernel(params_ref, meta_ref, nvalid_ref, x_ref, wt_ref,
                        out_ref, acc_ref):
    i = pl.program_id(0)
    tn = x_ref.shape[0]
    k_cfg = acc_ref.shape[0]

    @pl.when(i == 0)
    def _init():
        acc_ref[...] = jnp.zeros(acc_ref.shape, jnp.float32)

    x = x_ref[...]                       # (tn, din) f32
    wt = wt_ref[...]                     # (din, dout) bf16, resident across steps
    fp_min = meta_ref[0]
    row_ids = i * tn + lax.broadcasted_iota(jnp.int32, (tn, 1), 0)
    valid = row_ids < nvalid_ref[0]      # (tn, 1): padded-tail row mask

    # ---- candidate-invariant work, once per x tile -------------------------
    x_m = jnp.where(valid, x, fp_min)    # padded rows -> xq == x_m -> d == 0
    xr = x_m - fp_min                    # signed offset from fp_min
    xs = jnp.maximum(xr, 0.0)
    log_xs = jnp.log(jnp.maximum(xs, 1e-30))   # the only EUP pass per tile
    pos = xs > 0.0

    # ---- K candidates all reuse the VMEM-resident tile ----------------------
    def body(k, carry):
        scale_log = params_ref[0, k]
        scale_uni = params_ref[1, k]
        inv_su = params_ref[2, k]
        n_uni = params_ref[3, k]
        log_sl = params_ref[4, k]
        n_log_m1 = params_ref[5, k]
        # uniform region (reciprocal multiply instead of divide)
        q_u = jnp.clip(jnp.round((xs - scale_log) * inv_su), 0.0, n_uni)
        dq_u = scale_log + q_u * scale_uni
        # log2 region: exact 2**(-q) from exponent bits (pure VALU, no EUP exp)
        q_l = jnp.clip(jnp.round((log_sl - jnp.minimum(log_xs, log_sl)) * _INV_LN2),
                       0.0, n_log_m1)
        q_li = jnp.minimum(q_l.astype(jnp.int32), 126)
        pow2 = pltpu.bitcast((127 - q_li) << 23, jnp.float32)
        dq_l = jnp.where(pos, scale_log * pow2, 0.0)
        # d == xq - x  (xq = fp_min + selected dequant; fp_min cancels against xr)
        d = jnp.where(xs > scale_log, dq_u, dq_l) - xr
        err = jnp.dot(d.astype(jnp.bfloat16), wt,
                      preferred_element_type=jnp.float32)     # (tn, dout), f32 acc
        acc_ref[k] = acc_ref[k] + jnp.sum(err * err, axis=0, keepdims=True)
        return carry

    lax.fori_loop(0, k_cfg, body, 0)

    @pl.when(i == pl.num_programs(0) - 1)
    def _finalize():
        denom = meta_ref[1]              # n_rows * dout  (loss is a mean)
        out_ref[...] = jnp.sum(acc_ref[...], axis=2) / denom


# ---------------------------------------------------------------------------
# build + cache the jitted single-dispatch forward for a given problem shape
# ---------------------------------------------------------------------------
def _row_tile(n_rows, din, bytes_cap=8 * 1024 * 1024):
    n_rows_8 = ((n_rows + 7) // 8) * 8
    t = max(8, bytes_cap // (din * 4))
    t = (t // 256) * 256 if t >= 256 else (t // 8) * 8   # MXU-friendly row counts
    t = max(8, min(t, 2048))
    return min(t, n_rows_8)


def _vmem_limit_bytes(need):
    try:
        cap = int(pltpu.get_tpu_info().vmem_capacity_bytes)
    except Exception:
        cap = 64 * 1024 * 1024
    return int(min(max(need, 32 * 1024 * 1024), (cap * 3) // 4))


@functools.lru_cache(maxsize=None)
def _build_forward_fn(n_rows, din, dout, quant_min, quant_max,
                      range_rates, grid_rates):
    k_cfg = len(range_rates) * len(grid_rates)
    rr = np.array([r for r in range_rates for _ in grid_rates], np.float32)
    gr = np.array([g for _ in range_rates for g in grid_rates], np.float32)
    qrange = np.float32(quant_max - quant_min)

    tn = _row_tile(n_rows, din)
    npad = ((n_rows + tn - 1) // tn) * tn
    nblocks = npad // tn

    smem = pl.BlockSpec(memory_space=pltpu.MemorySpace.SMEM)
    vmem_need = (2 * tn * din * 4            # x tile, double-buffered
                 + 2 * din * dout * 2        # w.T (bf16), double-buffered
                 + 2 * k_cfg * dout * 4      # accumulator + output
                 + (8 << 20))                # temporaries / spill headroom
    cparams = pltpu.CompilerParams(
        dimension_semantics=("arbitrary",),
        vmem_limit_bytes=_vmem_limit_bytes(vmem_need))

    minmax_call = pl.pallas_call(
        _minmax_kernel,
        out_shape=(jax.ShapeDtypeStruct((1, 1), jnp.float32),
                   jax.ShapeDtypeStruct((1, 1), jnp.float32)),
        grid_spec=pltpu.PrefetchScalarGridSpec(
            num_scalar_prefetch=0,
            grid=(nblocks,),
            in_specs=[smem,
                      pl.BlockSpec((tn, din), lambda i: (i, 0))],
            out_specs=(pl.BlockSpec((1, 1), lambda i: (0, 0)),
                       pl.BlockSpec((1, 1), lambda i: (0, 0))),
            scratch_shapes=[pltpu.VMEM((1, din), jnp.float32),
                            pltpu.VMEM((1, din), jnp.float32)]),
        compiler_params=cparams)

    # TODO(synk): for very large linear layers, tile w.T over Dout with a second
    # ("parallel") grid axis -- also the natural split for v7x's 2 TensorCores;
    # here the full (Din, Dout) bf16 block stays VMEM-resident.
    # TODO(synk): w.T's index_map is constant, so pipeline_mode=pl.Buffered(1)
    # would halve its footprint again; left at the default for compatibility.
    # TODO(synk): when x fits in ~half of VMEM, fuse the minmax and loss passes
    # into one kernel so x is streamed from HBM only once.
    loss_call = pl.pallas_call(
        _hybrid_loss_kernel,
        out_shape=jax.ShapeDtypeStruct((k_cfg, 1), jnp.float32),
        grid_spec=pltpu.PrefetchScalarGridSpec(
            num_scalar_prefetch=0,
            grid=(nblocks,),
            in_specs=[smem, smem, smem,
                      pl.BlockSpec((tn, din), lambda i: (i, 0)),
                      pl.BlockSpec((din, dout), lambda i: (0, 0))],
            out_specs=pl.BlockSpec((k_cfg, 1), lambda i: (0, 0)),
            scratch_shapes=[pltpu.VMEM((k_cfg, 1, dout), jnp.float32)]),
        compiler_params=cparams)

    rr_j = jnp.asarray(rr)
    gr_j = jnp.asarray(gr)
    nvalid = jnp.full((1,), n_rows, jnp.int32)
    denom = np.float32(n_rows * dout)

    @jax.jit
    def run(x2d, weight, prev_min, prev_max, cnt_f, is_first):
        xpad = x2d if npad == n_rows else jnp.pad(x2d, ((0, npad - n_rows), (0, 0)))
        wt = weight.T.astype(jnp.bfloat16)           # bf16 MXU operand (f32 accum)
        mn, mx = minmax_call(nvalid, xpad)
        min_cur, max_cur = mn[0, 0], mx[0, 0]
        new_min = jnp.where(is_first, min_cur,
                            (prev_min * cnt_f + min_cur) / (cnt_f + 1.0))
        new_max = jnp.where(is_first, max_cur,
                            (prev_max * cnt_f + max_cur) / (cnt_f + 1.0))
        rng = jnp.maximum(new_max - new_min, _EPS)    # eps clamp: constant tensors
        scale_log = rng * rr_j
        scale_uni = rng * (1.0 - rr_j) / (qrange * (1.0 - gr_j))
        params = jnp.stack([scale_log, scale_uni, 1.0 / scale_uni,
                            qrange * (1.0 - gr_j), jnp.log(scale_log),
                            qrange * gr_j - 1.0], axis=0)
        meta = jnp.stack([new_min, jnp.float32(denom)])
        losses = loss_call(params, meta, nvalid, xpad, wt)
        return new_min, new_max, losses[:, 0]

    return run


# ---------------------------------------------------------------------------
# HybridParamObserver (per-tensor, ch_axis == -1)
# ---------------------------------------------------------------------------
class HybridParamObserverPallas:
    def __init__(self, bit=8, symmetric=False, ch_axis=-1):
        assert ch_axis == -1
        self.bit = bit
        self.symmetric = symmetric
        self.ch_axis = ch_axis
        self.eps = _EPS
        if symmetric:
            self.quant_min = -2 ** (bit - 1)
            self.quant_max = 2 ** (bit - 1) - 1
        else:
            self.quant_min = 0
            self.quant_max = 2 ** bit - 1
        self.range_rate_space = (0.1, 0.3, 0.5)
        self.grid_rate_space = (1.0 / 8, 1.0 / 4, 1.0 / 2)
        self.loss_list = []
        self.cnt = 0
        self.min_val = float("inf")    # running-average buffers (device scalars
        self.max_val = float("-inf")   # after the first forward call)
        self._initialized = False

    def forward(self, x, weight, bias=None):
        x = jnp.asarray(x, jnp.float32)
        if x.size == 0:
            return x
        weight = jnp.asarray(weight, jnp.float32)
        dout, din = weight.shape
        x2d = x.reshape(-1, din)
        n_rows = x2d.shape[0]

        run = _build_forward_fn(n_rows, din, dout, self.quant_min, self.quant_max,
                                self.range_rate_space, self.grid_rate_space)

        is_first = not self._initialized
        prev_min = jnp.float32(0.0) if is_first else self.min_val
        prev_max = jnp.float32(0.0) if is_first else self.max_val

        new_min, new_max, losses = run(x2d, weight, prev_min, prev_max,
                                       np.float32(self.cnt), is_first)

        # no host sync here: keep everything on device; callers materialize lazily
        self.min_val = new_min
        self.max_val = new_max
        self._initialized = True
        param_list = []
        idx = 0
        for rrate in self.range_rate_space:
            for grate in self.grid_rate_space:
                param_list.append((losses[idx], rrate, grate))
                idx += 1
        self.loss_list.append(param_list)
        self.cnt += 1
        return new_min, new_max, param_list


# ---------------------------------------------------------------------------
# pure-JAX reference of the (first-call) forward math, used for validation
# ---------------------------------------------------------------------------
def _reference_forward(x, weight, bias, obs):
    hp = lax.Precision.HIGHEST
    x = jnp.asarray(x, jnp.float32)
    w = jnp.asarray(weight, jnp.float32)
    b = jnp.asarray(bias, jnp.float32)
    min_val = float(jnp.min(x))
    max_val = float(jnp.max(x))
    one = np.float32(1.0)
    qrange = np.float32(obs.quant_max - obs.quant_min)
    rng = max(np.float32(max_val) - np.float32(min_val), np.float32(obs.eps))
    x2d = x.reshape(-1, w.shape[1])
    tgt = jnp.dot(x2d, w.T, precision=hp) + b
    losses = []
    for rrate in obs.range_rate_space:
        for grate in obs.grid_rate_space:
            rr32, gr32 = np.float32(rrate), np.float32(grate)
            scale_log = rng * rr32
            scale_uni = (rng * (one - rr32)) / (qrange * (one - gr32))
            xq = _hybrid_fake_quant(x2d, float(np.float32(min_val)),
                                    float(scale_log), float(scale_uni),
                                    float(qrange * gr32), float(qrange * (one - gr32)))
            pred = jnp.dot(xq, w.T, precision=hp) + b
            losses.append(float(jnp.mean((pred - tgt) ** 2)))
    return min_val, max_val, losses


if __name__ == "__main__":
    key = jax.random.PRNGKey(0)
    kx, kw, kb = jax.random.split(key, 3)
    # linear-layer activation observer: x (batch=2, seq=8, hidden=32), weight (64, 32)
    x = jax.random.normal(kx, (2, 8, 32), dtype=jnp.float32)
    w = 0.1 * jax.random.normal(kw, (64, 32), dtype=jnp.float32)
    b = 0.1 * jax.random.normal(kb, (64,), dtype=jnp.float32)

    obs = HybridParamObserverPallas(bit=8, symmetric=False, ch_axis=-1)
    new_min, new_max, param_list = obs.forward(x, w, b)
    jax.block_until_ready(new_min)

    # validate against a pure-JAX reference of the same forward math
    ref_min, ref_max, ref_losses = _reference_forward(x, w, b, obs)
    new_min_f, new_max_f = float(new_min), float(new_max)
    assert abs(new_min_f - ref_min) <= 1e-6 and abs(new_max_f - ref_max) <= 1e-6
    kern_losses = np.array([float(e) for (e, _, _) in param_list])
    assert np.all(np.isfinite(kern_losses)) and np.all(kern_losses >= 0.0)
    assert np.allclose(kern_losses, np.array(ref_losses), rtol=5e-2, atol=1e-8)
    assert obs.cnt == 1 and len(obs.loss_list) == 1 and len(obs.loss_list[0]) == 9

    # second call exercises the running-average branch and the cached compile
    mn2, mx2, params2 = obs.forward(x, w, b)
    jax.block_until_ready(params2[0][0])
    assert obs.cnt == 2 and len(obs.loss_list) == 2

    print("KERNEL_OK")
</pallas_src>

<mosaic_0001>
module attributes {stable_mosaic.version = 11 : i64} {
  func.func @_minmax_kernel(%arg0: i32, %arg1: memref<1xi32, #tpu.memory_space<smem>>, %arg2: memref<16x32xf32, #tpu.memory_space<vmem>>, %arg3: memref<1x1xf32, #tpu.memory_space<vmem>>, %arg4: memref<1x1xf32, #tpu.memory_space<vmem>>, %arg5: memref<1x32xf32, #tpu.memory_space<vmem>>, %arg6: memref<1x32xf32, #tpu.memory_space<vmem>>) attributes {dimension_semantics = [#tpu.dimension_semantics<arbitrary>], iteration_bounds = array<i64: 1>, scalar_prefetch = 0 : i64, scratch_operands = 2 : i64, tpu.core_type = #tpu.core_type<tc>, window_params = [{transform_indices = @transform_0, window_bounds = array<i64: 1>}, {transform_indices = @transform_1, window_bounds = array<i64: 16, 32>}, {pipeline_mode = #tpu.pipeline_mode<synchronous>, transform_indices = @transform_2, window_bounds = array<i64: 1, 1>}, {pipeline_mode = #tpu.pipeline_mode<synchronous>, transform_indices = @transform_3, window_bounds = array<i64: 1, 1>}]} {
    %c0_i32 = arith.constant 0 : i32
    %0 = arith.cmpi eq, %arg0, %c0_i32 : i32
    %1 = arith.extui %0 : i1 to i32
    %c0_i32_0 = arith.constant 0 : i32
    %2 = arith.cmpi ne, %1, %c0_i32_0 : i32
    scf.if %2 {
      %cst_16 = arith.constant 0x7F800000 : f32
      %32 = vector.broadcast %cst_16 : f32 to vector<1x32xf32>
      %c0_17 = arith.constant 0 : index
      %c0_18 = arith.constant 0 : index
      %33 = vector.load %arg5[%c0_17, %c0_18] : memref<1x32xf32, #tpu.memory_space<vmem>>, vector<1x32xf32>
      tpu.vector_store %arg5[%c0_17, %c0_18], %32 {strides = array<i32>} : memref<1x32xf32, #tpu.memory_space<vmem>>, vector<1x32xf32>,
      %cst_19 = arith.constant 0xFF800000 : f32
      %34 = vector.broadcast %cst_19 : f32 to vector<1x32xf32>
      %c0_20 = arith.constant 0 : index
      %c0_21 = arith.constant 0 : index
      %35 = vector.load %arg6[%c0_20, %c0_21] : memref<1x32xf32, #tpu.memory_space<vmem>>, vector<1x32xf32>
      tpu.vector_store %arg6[%c0_20, %c0_21], %34 {strides = array<i32>} : memref<1x32xf32, #tpu.memory_space<vmem>>, vector<1x32xf32>,
    } else {
    }
    %c0 = arith.constant 0 : index
    %c0_1 = arith.constant 0 : index
    %3 = vector.load %arg2[%c0, %c0_1] : memref<16x32xf32, #tpu.memory_space<vmem>>, vector<16x32xf32>
    %c16_i32 = arith.constant 16 : i32
    %4 = arith.muli %arg0, %c16_i32 : i32
    %5 = tpu.iota {dimensions = array<i32: 0>} : vector<16x1xi32>
    %6 = vector.broadcast %4 : i32 to vector<16x1xi32>
    %7 = arith.addi %6, %5 : vector<16x1xi32>
    %c0_2 = arith.constant 0 : index
    %8 = memref.load %arg1[%c0_2] : memref<1xi32, #tpu.memory_space<smem>>
    %9 = vector.broadcast %8 : i32 to vector<16x1xi32>
    %10 = arith.cmpi slt, %7, %9 : vector<16x1xi32>
    %c0_3 = arith.constant 0 : index
    %c0_4 = arith.constant 0 : index
    %11 = vector.load %arg5[%c0_3, %c0_4] : memref<1x32xf32, #tpu.memory_space<vmem>>, vector<1x32xf32>
    %cst = arith.constant 0x7F800000 : f32
    %12 = vector.shape_cast %10 : vector<16x1xi1> to vector<16x1xi1>
    %13 = vector.broadcast %12 : vector<16x1xi1> to vector<16x32xi1>
    %14 = vector.broadcast %cst : f32 to vector<16x32xf32>
    %15 = arith.select %13, %3, %14 : vector<16x32xi1>, vector<16x32xf32>
    %cst_5 = arith.constant dense<0x7F800000> : vector<32xf32>
    %16 = vector.multi_reduction <minimumf>, %15, %cst_5 [0] : vector<16x32xf32> to vector<32xf32>
    %17 = vector.shape_cast %16 : vector<32xf32> to vector<1x32xf32>
    %18 = arith.minimumf %11, %17 : vector<1x32xf32>
    %c0_6 = arith.constant 0 : index
    %c0_7 = arith.constant 0 : index
    %19 = vector.load %arg5[%c0_6, %c0_7] : memref<1x32xf32, #tpu.memory_space<vmem>>, vector<1x32xf32>
    tpu.vector_store %arg5[%c0_6, %c0_7], %18 {strides = array<i32>} : memref<1x32xf32, #tpu.memory_space<vmem>>, vector<1x32xf32>,
    %c0_8 = arith.constant 0 : index
    %c0_9 = arith.constant 0 : index
    %20 = vector.load %arg6[%c0_8, %c0_9] : memref<1x32xf32, #tpu.memory_space<vmem>>, vector<1x32xf32>
    %cst_10 = arith.constant 0xFF800000 : f32
    %21 = vector.shape_cast %10 : vector<16x1xi1> to vector<16x1xi1>
    %22 = vector.broadcast %21 : vector<16x1xi1> to vector<16x32xi1>
    %23 = vector.broadcast %cst_10 : f32 to vector<16x32xf32>
    %24 = arith.select %22, %3, %23 : vector<16x32xi1>, vector<16x32xf32>
    %cst_11 = arith.constant dense<0xFF800000> : vector<32xf32>
    %25 = vector.multi_reduction <maximumf>, %24, %cst_11 [0] : vector<16x32xf32> to vector<32xf32>
    %26 = vector.shape_cast %25 : vector<32xf32> to vector<1x32xf32>
    %27 = arith.maximumf %20, %26 : vector<1x32xf32>
    %c0_12 = arith.constant 0 : index
    %c0_13 = arith.constant 0 : index
    %28 = vector.load %arg6[%c0_12, %c0_13] : memref<1x32xf32, #tpu.memory_space<vmem>>, vector<1x32xf32>
    tpu.vector_store %arg6[%c0_12, %c0_13], %27 {strides = array<i32>} : memref<1x32xf32, #tpu.memory_space<vmem>>, vector<1x32xf32>,
    %c0_i32_14 = arith.constant 0 : i32
    %29 = arith.cmpi eq, %arg0, %c0_i32_14 : i32
    %30 = arith.extui %29 : i1 to i32
    %c0_i32_15 = arith.constant 0 : i32
    %31 = arith.cmpi ne, %30, %c0_i32_15 : i32
    scf.if %31 {
      %c0_16 = arith.constant 0 : index
      %c0_17 = arith.constant 0 : index
      %32 = vector.load %arg5[%c0_16, %c0_17] : memref<1x32xf32, #tpu.memory_space<vmem>>, vector<1x32xf32>
      %33 = vector.shape_cast %32 : vector<1x32xf32> to vector<1x1x32xf32>
      %cst_18 = arith.constant dense<0x7F800000> : vector<1xf32>
      %34 = vector.multi_reduction <minimumf>, %33, %cst_18 [1, 2] : vector<1x1x32xf32> to vector<1xf32>
      %35 = vector.shape_cast %34 : vector<1xf32> to vector<1x1x1xf32>
      %36 = vector.extract %35[0, 0, 0] : f32 from vector<1x1x1xf32>
      %37 = vector.broadcast %36 : f32 to vector<1x1xf32>
      %c0_19 = arith.constant 0 : index
      %c0_20 = arith.constant 0 : index
      %38 = vector.load %arg3[%c0_19, %c0_20] : memref<1x1xf32, #tpu.memory_space<vmem>>, vector<1x1xf32>
      tpu.vector_store %arg3[%c0_19, %c0_20], %37 {strides = array<i32>} : memref<1x1xf32, #tpu.memory_space<vmem>>, vector<1x1xf32>,
      %c0_21 = arith.constant 0 : index
      %c0_22 = arith.constant 0 : index
      %39 = vector.load %arg6[%c0_21, %c0_22] : memref<1x32xf32, #tpu.memory_space<vmem>>, vector<1x32xf32>
      %40 = vector.shape_cast %39 : vector<1x32xf32> to vector<1x1x32xf32>
      %cst_23 = arith.constant dense<0xFF800000> : vector<1xf32>
      %41 = vector.multi_reduction <maximumf>, %40, %cst_23 [1, 2] : vector<1x1x32xf32> to vector<1xf32>
      %42 = vector.shape_cast %41 : vector<1xf32> to vector<1x1x1xf32>
      %43 = vector.extract %42[0, 0, 0] : f32 from vector<1x1x1xf32>
      %44 = vector.broadcast %43 : f32 to vector<1x1xf32>
      %c0_24 = arith.constant 0 : index
      %c0_25 = arith.constant 0 : index
      %45 = vector.load %arg4[%c0_24, %c0_25] : memref<1x1xf32, #tpu.memory_space<vmem>>, vector<1x1xf32>
      tpu.vector_store %arg4[%c0_24, %c0_25], %44 {strides = array<i32>} : memref<1x1xf32, #tpu.memory_space<vmem>>, vector<1x1xf32>,
    } else {
    }
    return
  }
  func.func @transform_0(%arg0: i32) -> i32 {
    %c0_i32 = arith.constant 0 : i32
    %c0_i32_0 = arith.constant 0 : i32
    return %c0_i32 : i32
  }
  func.func @transform_1(%arg0: i32) -> (i32, i32) {
    %c0_i32 = arith.constant 0 : i32
    %c0_i32_0 = arith.constant 0 : i32
    return %arg0, %c0_i32 : i32, i32
  }
  func.func @transform_2(%arg0: i32) -> (i32, i32) {
    %c0_i32 = arith.constant 0 : i32
    %c0_i32_0 = arith.constant 0 : i32
    %c0_i32_1 = arith.constant 0 : i32
    return %c0_i32, %c0_i32_0 : i32, i32
  }
  func.func @transform_3(%arg0: i32) -> (i32, i32) {
    %c0_i32 = arith.constant 0 : i32
    %c0_i32_0 = arith.constant 0 : i32
    %c0_i32_1 = arith.constant 0 : i32
    return %c0_i32, %c0_i32_0 : i32, i32
  }
}

module attributes {stable_mosaic.version = 11 : i64} {
  func.func @_hybrid_loss_kernel(%arg0: i32, %arg1: memref<6x9xf32, #tpu.memory_space<smem>>, %arg2: memref<2xf32, #tpu.memory_space<smem>>, %arg3: memref<1xi32, #tpu.memory_space<smem>>, %arg4: memref<16x32xf32, #tpu.memory_space<vmem>>, %arg5: memref<32x64xbf16, #tpu.memory_space<vmem>>, %arg6: memref<9x1xf32, #tpu.memory_space<vmem>>, %arg7: memref<9x1x64xf32, #tpu.memory_space<vmem>>) attributes {dimension_semantics = [#tpu.dimension_semantics<arbitrary>], iteration_bounds = array<i64: 1>, scalar_prefetch = 0 : i64, scratch_operands = 1 : i64, tpu.core_type = #tpu.core_type<tc>, window_params = [{transform_indices = @transform_0, window_bounds = array<i64: 6, 9>}, {transform_indices = @transform_1, window_bounds = array<i64: 2>}, {transform_indices = @transform_2, window_bounds = array<i64: 1>}, {transform_indices = @transform_3, window_bounds = array<i64: 16, 32>}, {pipeline_mode = #tpu.pipeline_mode<synchronous>, transform_indices = @transform_4, window_bounds = array<i64: 32, 64>}, {pipeline_mode = #tpu.pipeline_mode<synchronous>, transform_indices = @transform_5, window_bounds = array<i64: 9, 1>}]} {
    %c0_i32 = arith.constant 0 : i32
    %0 = arith.cmpi eq, %arg0, %c0_i32 : i32
    %1 = arith.extui %0 : i1 to i32
    %c0_i32_0 = arith.constant 0 : i32
    %2 = arith.cmpi ne, %1, %c0_i32_0 : i32
    scf.if %2 {
      %cst_12 = arith.constant 0.000000e+00 : f32
      %30 = vector.broadcast %cst_12 : f32 to vector<9x1x64xf32>
      %c0_13 = arith.constant 0 : index
      %c0_14 = arith.constant 0 : index
      %c0_15 = arith.constant 0 : index
      %31 = vector.load %arg7[%c0_13, %c0_14, %c0_15] : memref<9x1x64xf32, #tpu.memory_space<vmem>>, vector<9x1x64xf32>
      tpu.vector_store %arg7[%c0_13, %c0_14, %c0_15], %30 {strides = array<i32>} : memref<9x1x64xf32, #tpu.memory_space<vmem>>, vector<9x1x64xf32>,
    } else {
    }
    %c0 = arith.constant 0 : index
    %c0_1 = arith.constant 0 : index
    %3 = vector.load %arg4[%c0, %c0_1] : memref<16x32xf32, #tpu.memory_space<vmem>>, vector<16x32xf32>
    %c0_2 = arith.constant 0 : index
    %c0_3 = arith.constant 0 : index
    %4 = vector.load %arg5[%c0_2, %c0_3] : memref<32x64xbf16, #tpu.memory_space<vmem>>, vector<32x64xbf16>
    %c0_4 = arith.constant 0 : index
    %5 = memref.load %arg2[%c0_4] : memref<2xf32, #tpu.memory_space<smem>>
    %c16_i32 = arith.constant 16 : i32
    %6 = arith.muli %arg0, %c16_i32 : i32
    %7 = tpu.iota {dimensions = array<i32: 0>} : vector<16x1xi32>
    %8 = vector.broadcast %6 : i32 to vector<16x1xi32>
    %9 = arith.addi %8, %7 : vector<16x1xi32>
    %c0_5 = arith.constant 0 : index
    %10 = memref.load %arg3[%c0_5] : memref<1xi32, #tpu.memory_space<smem>>
    %11 = vector.broadcast %10 : i32 to vector<16x1xi32>
    %12 = arith.cmpi slt, %9, %11 : vector<16x1xi32>
    %13 = vector.shape_cast %12 : vector<16x1xi1> to vector<16x1xi1>
    %14 = vector.broadcast %13 : vector<16x1xi1> to vector<16x32xi1>
    %15 = vector.broadcast %5 : f32 to vector<16x32xf32>
    %16 = arith.select %14, %3, %15 : vector<16x32xi1>, vector<16x32xf32>
    %17 = vector.broadcast %5 : f32 to vector<16x32xf32>
    %18 = arith.subf %16, %17 : vector<16x32xf32>
    %cst = arith.constant 0.000000e+00 : f32
    %19 = vector.broadcast %cst : f32 to vector<16x32xf32>
    %20 = arith.maximumf %18, %19 : vector<16x32xf32>
    %cst_6 = arith.constant 1.000000e-30 : f32
    %21 = vector.broadcast %cst_6 : f32 to vector<16x32xf32>
    %22 = arith.maximumf %20, %21 : vector<16x32xf32>
    %23 = math.log %22 : vector<16x32xf32>
    %cst_7 = arith.constant 0.000000e+00 : f32
    %24 = vector.broadcast %cst_7 : f32 to vector<16x32xf32>
    %25 = arith.cmpf ogt, %20, %24 : vector<16x32xf32>
    %c0_i32_8 = arith.constant 0 : i32
    %c9_i32 = arith.constant 9 : i32
    %26 = arith.addi %c0_i32_8, %c9_i32 : i32
    %c1_i32 = arith.constant 1 : i32
    scf.for %arg8 = %c0_i32_8 to %26 step %c1_i32  : i32 {
      %c0_12 = arith.constant 0 : index
      %30 = arith.index_cast %arg8 : i32 to index
      %31 = memref.load %arg1[%c0_12, %30] : memref<6x9xf32, #tpu.memory_space<smem>>
      %c1 = arith.constant 1 : index
      %32 = arith.index_cast %arg8 : i32 to index
      %33 = memref.load %arg1[%c1, %32] : memref<6x9xf32, #tpu.memory_space<smem>>
      %c2 = arith.constant 2 : index
      %34 = arith.index_cast %arg8 : i32 to index
      %35 = memref.load %arg1[%c2, %34] : memref<6x9xf32, #tpu.memory_space<smem>>
      %c3 = arith.constant 3 : index
      %36 = arith.index_cast %arg8 : i32 to index
      %37 = memref.load %arg1[%c3, %36] : memref<6x9xf32, #tpu.memory_space<smem>>
      %c4 = arith.constant 4 : index
      %38 = arith.index_cast %arg8 : i32 to index
      %39 = memref.load %arg1[%c4, %38] : memref<6x9xf32, #tpu.memory_space<smem>>
      %c5 = arith.constant 5 : index
      %40 = arith.index_cast %arg8 : i32 to index
      %41 = memref.load %arg1[%c5, %40] : memref<6x9xf32, #tpu.memory_space<smem>>
      %42 = vector.broadcast %31 : f32 to vector<16x32xf32>
      %43 = arith.subf %20, %42 : vector<16x32xf32>
      %44 = vector.broadcast %35 : f32 to vector<16x32xf32>
      %45 = arith.mulf %43, %44 : vector<16x32xf32>
      %46 = math.roundeven %45 : vector<16x32xf32>
      %cst_13 = arith.constant 0.000000e+00 : f32
      %47 = vector.broadcast %cst_13 : f32 to vector<16x32xf32>
      %48 = arith.maximumf %47, %46 : vector<16x32xf32>
      %49 = vector.broadcast %37 : f32 to vector<16x32xf32>
      %50 = arith.minimumf %49, %48 : vector<16x32xf32>
      %51 = vector.broadcast %33 : f32 to vector<16x32xf32>
      %52 = arith.mulf %50, %51 : vector<16x32xf32>
      %53 = vector.broadcast %31 : f32 to vector<16x32xf32>
      %54 = arith.addf %53, %52 : vector<16x32xf32>
      %55 = vector.broadcast %39 : f32 to vector<16x32xf32>
      %56 = arith.minimumf %23, %55 : vector<16x32xf32>
      %57 = vector.broadcast %39 : f32 to vector<16x32xf32>
      %58 = arith.subf %57, %56 : vector<16x32xf32>
      %cst_14 = arith.constant 1.44269502 : f32
      %59 = vector.broadcast %cst_14 : f32 to vector<16x32xf32>
      %60 = arith.mulf %58, %59 : vector<16x32xf32>
      %61 = math.roundeven %60 : vector<16x32xf32>
      %cst_15 = arith.constant 0.000000e+00 : f32
      %62 = vector.broadcast %cst_15 : f32 to vector<16x32xf32>
      %63 = arith.maximumf %62, %61 : vector<16x32xf32>
      %64 = vector.broadcast %41 : f32 to vector<16x32xf32>
      %65 = arith.minimumf %64, %63 : vector<16x32xf32>
      %66 = arith.fptosi %65 : vector<16x32xf32> to vector<16x32xi32>
      %c126_i32 = arith.constant 126 : i32
      %67 = vector.broadcast %c126_i32 : i32 to vector<16x32xi32>
      %68 = arith.minsi %66, %67 : vector<16x32xi32>
      %c127_i32 = arith.constant 127 : i32
      %69 = vector.broadcast %c127_i32 : i32 to vector<16x32xi32>
      %70 = arith.subi %69, %68 : vector<16x32xi32>
      %c23_i32 = arith.constant 23 : i32
      %71 = vector.broadcast %c23_i32 : i32 to vector<16x32xi32>
      %72 = arith.shli %70, %71 : vector<16x32xi32>
      %73 = tpu.bitcast %72 : vector<16x32xi32> -> vector<16x32xf32>
      %74 = vector.broadcast %31 : f32 to vector<16x32xf32>
      %75 = arith.mulf %74, %73 : vector<16x32xf32>
      %cst_16 = arith.constant 0.000000e+00 : f32
      %76 = vector.broadcast %cst_16 : f32 to vector<16x32xf32>
      %77 = arith.select %25, %75, %76 : vector<16x32xi1>, vector<16x32xf32>
      %78 = vector.broadcast %31 : f32 to vector<16x32xf32>
      %79 = arith.cmpf ogt, %20, %78 : vector<16x32xf32>
      %80 = arith.select %79, %54, %77 : vector<16x32xi1>, vector<16x32xf32>
      %81 = arith.subf %80, %18 : vector<16x32xf32>
      %82 = arith.truncf %81 : vector<16x32xf32> to vector<16x32xbf16>
      %cst_17 = arith.constant dense<0.000000e+00> : vector<16x64xf32>
      %83 = tpu.matmul %82, %4, %cst_17 {dimension_numbers = #tpu.dot_dimension_numbers<[1], [0], [0], [1], [0, 0, 1, 1], [], []>} : vector<16x32xbf16>, vector<32x64xbf16>, vector<16x64xf32> -> vector<16x64xf32>
      %84 = arith.index_cast %arg8 : i32 to index
      %c0_18 = arith.constant 0 : index
      %c0_19 = arith.constant 0 : index
      %85 = vector.load %arg7[%84, %c0_18, %c0_19] : memref<9x1x64xf32, #tpu.memory_space<vmem>>, vector<1x1x64xf32>
      %86 = vector.shape_cast %85 : vector<1x1x64xf32> to vector<1x64xf32>
      %87 = arith.mulf %83, %83 : vector<16x64xf32>
      %cst_20 = arith.constant dense<0.000000e+00> : vector<64xf32>
      %88 = vector.multi_reduction <add>, %87, %cst_20 [0] : vector<16x64xf32> to vector<64xf32>
      %89 = vector.shape_cast %88 : vector<64xf32> to vector<1x64xf32>
      %90 = arith.addf %86, %89 : vector<1x64xf32>
      %91 = arith.index_cast %arg8 : i32 to index
      %c0_21 = arith.constant 0 : index
      %c0_22 = arith.constant 0 : index
      %92 = vector.load %arg7[%91, %c0_21, %c0_22] : memref<9x1x64xf32, #tpu.memory_space<vmem>>, vector<1x1x64xf32>
      %93 = vector.shape_cast %92 : vector<1x1x64xf32> to vector<1x64xf32>
      %94 = vector.shape_cast %90 : vector<1x64xf32> to vector<1x1x64xf32>
      tpu.vector_store %arg7[%91, %c0_21, %c0_22], %94 {strides = array<i32>} : memref<9x1x64xf32, #tpu.memory_space<vmem>>, vector<1x1x64xf32>,
    }
    %c9_i32_9 = arith.constant 9 : i32
    %c0_i32_10 = arith.constant 0 : i32
    %27 = arith.cmpi eq, %arg0, %c0_i32_10 : i32
    %28 = arith.extui %27 : i1 to i32
    %c0_i32_11 = arith.constant 0 : i32
    %29 = arith.cmpi ne, %28, %c0_i32_11 : i32
    scf.if %29 {
      %c1 = arith.constant 1 : index
      %30 = memref.load %arg2[%c1] : memref<2xf32, #tpu.memory_space<smem>>
      %c0_12 = arith.constant 0 : index
      %c0_13 = arith.constant 0 : index
      %c0_14 = arith.constant 0 : index
      %31 = vector.load %arg7[%c0_12, %c0_13, %c0_14] : memref<9x1x64xf32, #tpu.memory_space<vmem>>, vector<9x1x64xf32>
      %cst_15 = arith.constant dense<0.000000e+00> : vector<9x1xf32>
      %32 = vector.multi_reduction <add>, %31, %cst_15 [2] : vector<9x1x64xf32> to vector<9x1xf32>
      %33 = vector.broadcast %30 : f32 to vector<9x1xf32>
      %34 = arith.divf %32, %33 : vector<9x1xf32>
      %c0_16 = arith.constant 0 : index
      %c0_17 = arith.constant 0 : index
      %35 = vector.load %arg6[%c0_16, %c0_17] : memref<9x1xf32, #tpu.memory_space<vmem>>, vector<9x1xf32>
      tpu.vector_store %arg6[%c0_16, %c0_17], %34 {strides = array<i32>} : memref<9x1xf32, #tpu.memory_space<vmem>>, vector<9x1xf32>,
    } else {
    }
    return
  }
  func.func @transform_0(%arg0: i32) -> (i32, i32) {
    %c0_i32 = arith.constant 0 : i32
    %c0_i32_0 = arith.constant 0 : i32
    %c0_i32_1 = arith.constant 0 : i32
    return %c0_i32, %c0_i32_0 : i32, i32
  }
  func.func @transform_1(%arg0: i32) -> i32 {
    %c0_i32 = arith.constant 0 : i32
    %c0_i32_0 = arith.constant 0 : i32
    return %c0_i32 : i32
  }
  func.func @transform_2(%arg0: i32) -> i32 {
    %c0_i32 = arith.constant 0 : i32
    %c0_i32_0 = arith.constant 0 : i32
    return %c0_i32 : i32
  }
  func.func @transform_3(%arg0: i32) -> (i32, i32) {
    %c0_i32 = arith.constant 0 : i32
    %c0_i32_0 = arith.constant 0 : i32
    return %arg0, %c0_i32 : i32, i32
  }
  func.func @transform_4(%arg0: i32) -> (i32, i32) {
    %c0_i32 = arith.constant 0 : i32
    %c0_i32_0 = arith.constant 0 : i32
    %c0_i32_1 = arith.constant 0 : i32
    return %c0_i32, %c0_i32_0 : i32, i32
  }
  func.func @transform_5(%arg0: i32) -> (i32, i32) {
    %c0_i32 = arith.constant 0 : i32
    %c0_i32_0 = arith.constant 0 : i32
    %c0_i32_1 = arith.constant 0 : i32
    return %c0_i32, %c0_i32_0 : i32, i32
  }
}

</mosaic_0001>

<bundles_post_ra>
// kernel: run.2
= control target key start
LH: loop header
LB: loop body
LE: loop exit
PB: predicated region body
PF: predicated region fallthrough
CT: control target
= control target key end

     0   :  { %10 = vsyncpa [#allocation6], 0  ;;  %vm20_vm0 = vcmask 253952   ;;  %v26_v0 = vlaneseq  ;;  %v180_v1 = vmov inf   ;;  %v181_v2 = vmov -inf   ;;  %s227_s0 = inlined_call_operand.<no memory space> [shape: s32[1], index: 0, kind: input, shape index: {}]   ;;  %s228_s1 = inlined_call_operand.vmem [shape: f32[16,32], index: 1, kind: input, shape index: {}]   ;;  %s229_s2 = inlined_call_operand.hbm [shape: f32[1,1], index: 2, kind: output, shape index: {0}]   ;;  %s230_s3 = inlined_call_operand.hbm [shape: f32[1,1], index: 3, kind: output, shape index: {1}]  }
   0x1   :  { %21 = vst.msk [vmem:[#allocation2] sm:$0x1] %vm20_vm0, %v180_v1  ;;  %22 = vst.msk [vmem:[#allocation3] sm:$0x1] %vm20_vm0, %v181_v2  ;;  %v33_v3 = vstv %s227_s0 }
   0x2   :  { %11 = vsyncpa [#allocation8], 0  ;;  %v23_v4 = vld [vmem:[%s228_s1] sm:$0xff]  ;;  %v27_v5 = vshrl.u32 %v26_v0, 7  ;;  %vm43_vm1 = vcmask 261120   ;;  %v24_v6 = vld [vmem:[%s228_s1 + $0x8] sm:$0xff] }
   0x3   :  { %s182_s0 = smov [#allocation5]   ;;  %vm85_vm4 = vcmask 0   ;;  %s183_s19 = smov [#allocation7]  }
   0x4   :  { %v28_v7 = vadd.s32 8, %v27_v5  ;;  %vm34_vm2 = vcmp.lt.s32.totalorder %v27_v5, %v33_v3  ;;  %s106_s1 = sshll.u32 %s182_s0, 4  ;;  %s116_s20 = sshll.u32 %s183_s19, 4  ;;  %s107_s1 = int_to_ptr.vmem [resolvable:$true] %s106_s1  ;;  %s117_s20 = int_to_ptr.vmem [resolvable:$true] %s116_s20 }
   0x5   :  { %v41_v8 = vsel %vm34_vm2, %v23_v4, inf  ;;  %v57_v9 = vsel %vm34_vm2, %v23_v4, -inf  ;;  %s136_s21 = scalar_lea.vmem %s107_s1, 16  ;;  %s140_s22 = scalar_lea.vmem %s107_s1, 32 }
   0x6   :  { %vm35_vm3 = vcmp.lt.s32.totalorder %v28_v7, %v33_v3  ;;  %v44_v10 = vsel %vm43_vm1, %v41_v8, inf  ;;  %v59_v11 = vsel %vm43_vm1, %v57_v9, -inf  ;;  %p137_p0 = scmp.ne.s32.totalorder %s107_s1, %s136_s21  ;;  %p141_p1 = scmp.lt.s32.totalorder %s107_s1, %s107_s1 }
   0x7   :  { %v42_v12 = vsel %vm35_vm3, %v24_v6, inf  ;;  %v58_v13 = vsel %vm35_vm3, %v24_v6, -inf  ;;  %p142_p2 = scmp.lt.s32.totalorder %s140_s22, %s136_s21 }
   0x8   :  { %v45_v14 = vsel %vm43_vm1, %v42_v12, inf  ;;  %v60_v15 = vsel %vm43_vm1, %v58_v13, -inf  ;;  %v36_v28 = vld [vmem:[#allocation2] sm:$0x1]  ;;  %v56_v29 = vld [vmem:[#allocation3] sm:$0x1] }
   0x9   :  { %v46_v16 = vmin.f32 %v44_v10, %v45_v14  ;;  %v61_v17 = vmax.f32 %v59_v11, %v60_v15  ;;  %p143_p3 = por %p142_p2, %p141_p1 }
   0xb   :  { %v47_v18 = vrot.slane %v46_v16, 4  ;;  %v62_v19 = vrot.slane %v61_v17, 4  ;;  %p144_p4 = pnand %p143_p3, %p137_p0 }
   0xd   :  { %v48_v20 = vmin.f32 %v46_v16, %v47_v18  ;;  %v63_v21 = vmax.f32 %v61_v17, %v62_v19 }
   0xf   :  { %v49_v22 = vrot.slane %v48_v20, 2  ;;  %v64_v23 = vrot.slane %v63_v21, 2 }
  0x11   :  { %v50_v24 = vmin.f32 %v48_v20, %v49_v22  ;;  %v65_v25 = vmax.f32 %v63_v21, %v64_v23 }
  0x13   :  { %v51_v26 = vrot.slane %v50_v24, 1  ;;  %v66_v27 = vrot.slane %v65_v25, 1 }
  0x15   :  { %v52_v30 = vmin.f32 %v50_v24, %v51_v26  ;;  %v67_v31 = vmax.f32 %v65_v25, %v66_v27 }
  0x17   :  { %v53_v32 = vmin.f32 %v36_v28, %v52_v30  ;;  %v68_v33 = vmax.f32 %v56_v29, %v67_v31 }
  0x19   :  { %55 = vst.msk [vmem:[#allocation2] sm:$0x1] %vm20_vm0, %v53_v32  ;;  %69 = vst.msk [vmem:[#allocation3] sm:$0x1] %vm20_vm0, %v68_v33 }
  0x20   :  { %v73_v34 = vld [vmem:[#allocation2] sm:$0x1]  ;;  %v87_v35 = vld [vmem:[#allocation3] sm:$0x1] }
  0x21   :  { %v74_v36 = vsel %vm20_vm0, %v73_v34, inf  ;;  %v88_v37 = vsel %vm20_vm0, %v87_v35, -inf }
  0x22   :  { %75 = vmin.xlane.f32.xlu0 %v74_v36 }
  0x26   :  { %89 = vmax.xlane.f32.xlu0 %v88_v37 }
  0xab   :  { %v76_v38 = vpop.xlane.xlu0 %75 }
  0xac   :  { %v77_v39 = vrot.slane %v76_v38, 4 }
  0xae   :  { %v78_v40 = vmin.f32 %v76_v38, %v77_v39 }
  0xaf   :  { %v90_v41 = vpop.xlane.xlu0 %89 }
  0xb0   :  { %v79_v42 = vrot.slane %v78_v40, 2  ;;  %v91_v43 = vrot.slane %v90_v41, 4 }
  0xb2   :  { %v92_v44 = vmax.f32 %v90_v41, %v91_v43  ;;  %v80_v45 = vmin.f32 %v78_v40, %v79_v42 }
  0xb4   :  { %v93_v46 = vrot.slane %v92_v44, 2  ;;  %v81_v47 = vrot.slane %v80_v45, 1 }
  0xb6   :  { %v94_v48 = vmax.f32 %v92_v44, %v93_v46  ;;  %v82_v49 = vmin.f32 %v80_v45, %v81_v47 }
  0xb8   :  { %128 = vpush %v82_v49  ;;  %v95_v50 = vrot.slane %v94_v48, 1 }
  0xba   :  { %v96_v51 = vmax.f32 %v94_v48, %v95_v50 }
  0xbc   :  { %130 = vpush %v96_v51 }
  0xe9   :  { %s129_s18 = spop %128 }
  0xea   :  { %v84_v52 = vstv %s129_s18 }
  0xeb   :  { %86 = vst.msk [vmem:[#allocation5] sm:$0x1] %vm85_vm4, %v84_v52 }
  0xec   :  { %147 = shalt.err (!%p144_p4)
}
  0xed   :  { %109 = dma.vmem_to_hbm [thread:$0]  %s107_s1, 16, %s229_s2, [#allocation6]  }
  0xee   :  { %s131_s25 = spop %130  ;;  %s156_s26 = scalar_lea.vmem %s117_s20, 16 }
  0xef   :  { %v98_v53 = vstv %s131_s25  ;;  %p157_p5 = scmp.ne.s32.totalorder %s117_s20, %s156_s26  ;;  %s160_s27 = scalar_lea.vmem %s117_s20, 32 }
  0xf0   :  { %99 = vst.msk [vmem:[#allocation7] sm:$0x1] %vm85_vm4, %v98_v53  ;;  %p161_p6 = scmp.lt.s32.totalorder %s117_s20, %s117_s20  ;;  %p162_p7 = scmp.lt.s32.totalorder %s160_s27, %s156_s26 }
  0xf2   :  { %p163_p8 = por %p162_p7, %p161_p6 }
  0xf4   :  { %p164_p9 = pnand %p163_p8, %p157_p5 }
  0xf6   :  { %167 = shalt.err (!%p164_p9)
}
  0xf7   :  { %119 = dma.vmem_to_hbm [thread:$0]  %s117_s20, 16, %s230_s3, [#allocation8]  }
  0xf8   :  { %176 = dma.done.wait [#allocation6], 16  }
  0xf9   :  { %177 = vsyncadd [#allocation6], 4294967280 }
  0xfa   :  { %178 = dma.done.wait [#allocation8], 16  }
  0xfb   :  { %179 = vsyncadd [#allocation8], 4294967280 }
  0xfc   :  { %126 = vsyncpa [#allocation6], 1 }
  0xfd   :  { %127 = vsyncpa [#allocation8], 1 }

// kernel: run.3
= control target key start
LH: loop header
LB: loop body
LE: loop exit
PB: predicated region body
PF: predicated region fallthrough
CT: control target
= control target key end

     0   :  { %11 = vsyncpa [#allocation5], 0  ;;  %s653_s0 = inlined_call_operand.vmem [shape: f32[6,9], index: 0, kind: input, shape index: {}]   ;;  %s654_s1 = inlined_call_operand.vmem [shape: f32[2], index: 1, kind: input, shape index: {}]   ;;  %s655_s2 = inlined_call_operand.<no memory space> [shape: s32[1], index: 2, kind: input, shape index: {}]   ;;  %s656_s3 = inlined_call_operand.vmem [shape: f32[16,32], index: 3, kind: input, shape index: {}]   ;;  %s657_s4 = inlined_call_operand.vmem [shape: bf16[32,64], index: 4, kind: input, shape index: {}]   ;;  %s658_s5 = inlined_call_operand.vmem [shape: f32[9,1], index: 5, kind: output, shape index: {}]  }
   0x1   :  { %s19_s20 = sshll.u32 %s653_s0, 4  ;;  %s20_s20 = int_to_ptr.vmem [resolvable:$true] %s19_s20 }
   0x2   :  { %12 = vsyncpa [#allocation7], 0  ;;  %s29_s23 = sshll.u32 %s654_s1, 4  ;;  %s443_s24 = scalar_lea.vmem %s20_s20, 128  ;;  %s30_s23 = int_to_ptr.vmem [resolvable:$true] %s29_s23 }
   0x3   :  { %p444_p0 = scmp.ne.s32.totalorder %s20_s20, %s443_s24  ;;  %p448_p1 = scmp.lt.s32.totalorder %s20_s20, %s20_s20 }
   0x4   :  { %p449_p2 = scmp.lt.s32.totalorder %s443_s24, %s443_s24 }
   0x6   :  { %p450_p3 = por %p449_p2, %p448_p1 }
   0x8   :  { %p451_p4 = pnand %p450_p3, %p444_p0 }
   0xa   :  { %454 = shalt.err (!%p451_p4)
}
   0xb   :  { %s479_s25 = smov [#allocation4]   ;;  %s455_s26 = scalar_lea.vmem %s30_s23, 16 }
   0xc   :  { %22 = dma.vmem_to_smem %s20_s20, 128, %s479_s25, [#allocation5]  }
   0xd   :  { %p456_p5 = scmp.ne.s32.totalorder %s30_s23, %s455_s26  ;;  %p460_p6 = scmp.lt.s32.totalorder %s30_s23, %s30_s23 }
   0xe   :  { %p461_p7 = scmp.lt.s32.totalorder %s455_s26, %s455_s26 }
  0x10   :  { %p462_p8 = por %p461_p7, %p460_p6 }
  0x12   :  { %p463_p9 = pnand %p462_p8, %p456_p5 }
  0x14   :  { %466 = shalt.err (!%p463_p9)
}
  0x15   :  { %s480_s0 = smov [#allocation6]  }
  0x16   :  { %32 = dma.vmem_to_smem %s30_s23, 16, %s480_s0, [#allocation7]  }
  0x17   :  { %471 = dma.done.wait [#allocation5], 128  }
  0x18   :  { %472 = vsyncadd [#allocation5], 4294967168 }
  0x19   :  { %473 = dma.done.wait [#allocation7], 16  }
  0x1a   :  { %474 = vsyncadd [#allocation7], 4294967280 }
  0x1b   :  { %45 = sfence }
  0x1c   :  { %vm51_vm0 = vcmask 516096   ;;  %v523_v0 = vld [vmem:[%s657_s4] sm:$0xf]  ;;  %v69_v1 = vlaneseq  ;;  %v481_v2 = vmov 0.0   ;;  %v537_v3 = vld [vmem:[%s657_s4 + $0x4] sm:$0xf]  ;;  %v76_v7 = vstv %s655_s2 }
  0x1d   :  { %52 = vst.msk [vmem:[#allocation2] sm:$0x1] %vm51_vm0, %v481_v2  ;;  %53 = vst.msk [vmem:[#allocation2 + $0x1] sm:$0x1] %vm51_vm0, %v481_v2  ;;  %v542_v4 = vld [vmem:[%s657_s4 + $0x8] sm:$0xf] }
  0x1e   :  { %54 = vst.msk [vmem:[#allocation2 + $0x2] sm:$0x1] %vm51_vm0, %v481_v2  ;;  %55 = vst.msk [vmem:[#allocation2 + $0x3] sm:$0x1] %vm51_vm0, %v481_v2  ;;  %v547_v5 = vld [vmem:[%s657_s4 + $0xc] sm:$0xf] }
  0x1f   :  { %56 = vst.msk [vmem:[#allocation2 + $0x4] sm:$0x1] %vm51_vm0, %v481_v2  ;;  %57 = vst.msk [vmem:[#allocation2 + $0x5] sm:$0x1] %vm51_vm0, %v481_v2  ;;  %s67_s9 = sld [smem:[#allocation6]]  ;;  %v70_v6 = vshrl.u32 %v69_v1, 7 }
  0x20   :  { %58 = vst.msk [vmem:[#allocation2 + $0x6] sm:$0x1] %vm51_vm0, %v481_v2  ;;  %59 = vst.msk [vmem:[#allocation2 + $0x7] sm:$0x1] %vm51_vm0, %v481_v2  ;;  %v61_v9 = vld [vmem:[%s656_s3] sm:$0xff]  ;;  %v62_v10 = vld [vmem:[%s656_s3 + $0x8] sm:$0xff] }
  0x21   :  { %60 = vst.msk [vmem:[#allocation2 + $0x8] sm:$0x1] %vm51_vm0, %v481_v2  ;;  %v71_v8 = vadd.s32 8, %v70_v6  ;;  %vm77_vm1 = vcmp.lt.s32.totalorder %v70_v6, %v76_v7  ;;  %s576_s2 = smov 0  }
  0x23   :  { %vm78_vm2 = vcmp.lt.s32.totalorder %v71_v8, %v76_v7 }
  0x25   :  { %v83_v11 = vstv %s67_s9 }
  0x26   :  { %v84_v12 = vsel %vm77_vm1, %v61_v9, %v83_v11  ;;  %v85_v13 = vsel %vm78_vm2, %v62_v10, %v83_v11 }
  0x27   :  { %v558_v14 = vsub.f32 %v84_v12, %v83_v11  ;;  %v560_v15 = vsub.f32 %v85_v13, %v83_v11 }
  0x29   :  { %v563_v16 = vmax.f32 %v558_v14, 0.0  ;;  %v566_v17 = vmax.f32 %v560_v15, 0.0 }
  0x2b   :  { %v90_v18 = vmax.f32 %v563_v16, 1e-30  ;;  %v91_v19 = vmax.f32 %v566_v17, 1e-30  ;;  %vm96_vm3 = vcmp.gt.f32.partialorder %v563_v16, 0.0  ;;  %vm97_vm4 = vcmp.gt.f32.partialorder %v566_v17, 0.0 }
  0x2d   :  { %437 = vlog2.f32 %v90_v18 }
  0x2e   :  { %439 = vlog2.f32 %v91_v19 }
  0x3a   :  { %v438_v20 = vpop.eup %437 }
  0x3b   :  { %v440_v21 = vpop.eup %439  ;;  %v572_v22 = vmul.f32 0.6931472, %v438_v20 }
  0x3c   :  { %v574_v23 = vmul.f32 0.6931472, %v440_v21 }
  0x3d LB: > { %v364_v24 = vcombine.low %v542_v4, %v547_v5  ;;  %v482_v25 = vmov 0.0   ;;  %vm483_vm5 = vmmov 0   ;;  %v363_v26 = vcombine.low %v523_v0, %v537_v3  ;;  %s104_s3 = sld [smem:[#allocation4 + %s477_s2]]  ;;  %s105_s4 = sshra.s32 %s477_s2, 7  ;;  %s477_s2 = sphi %s576_s2, %s103_s2  }
  0x3e   : > { %380 = vmatprep.subr.bf16.mxu0 %v482_v25  ;;  %384 = vmatprep.mubr.msk.bf16.mxu0 %vm483_vm5, %v482_v25  ;;  %s587_s16 = sshll.u32 %s105_s4, 7  ;;  %s590_s17 = sand.u32 127, %s477_s2  ;;  %vm196_vm14 = vcmask 261120   ;;  %vm245_vm15 = vcmask 523264  }
  0x3f   : > { %381 = vmatpush3.bf16.msra.mxu0 %v364_v24  ;;  %s370_s18 = sadd.s32 256, %s587_s16  ;;  %s374_s21 = sadd.s32 512, %s587_s16 }
  0x40   : > { %382 = vmatprep.subr.bf16.mxu0 %v482_v25  ;;  %s115_s19 = sadd.s32 %s370_s18, %s590_s17  ;;  %s123_s22 = sadd.s32 %s374_s21, %s590_s17 }
  0x41   : > { %s116_s20 = sld [smem:[#allocation4 + %s115_s19]]  ;;  %s376_s24 = sadd.s32 640, %s587_s16 }
  0x42   : > { %s124_s23 = sld [smem:[#allocation4 + %s123_s22]]  ;;  %s372_s25 = sadd.s32 384, %s587_s16 }
  0x43   : > { %383 = vmatpush3.bf16.msra.mxu0 %v363_v26  ;;  %v595_v27 = vstv %s104_s3  ;;  %s127_s26 = sadd.s32 %s376_s24, %s590_s17  ;;  %s119_s0 = sadd.s32 %s372_s25, %s590_s17 }
  0x44   : > { %v130_v28 = vsub.f32 %v563_v16, %v595_v27  ;;  %v131_v29 = vsub.f32 %v566_v17, %v595_v27  ;;  %s608_s1 = sld [smem:[#allocation4 + %s127_s26]]  ;;  %s368_s27 = sadd.s32 128, %s587_s16  ;;  %vm177_vm12 = vcmp.gt.f32.partialorder %v563_v16, %v595_v27  ;;  %vm178_vm13 = vcmp.gt.f32.partialorder %v566_v17, %v595_v27 }
  0x45   : > { %s120_s28 = sld [smem:[#allocation4 + %s119_s0]]  ;;  %s111_s29 = sadd.s32 %s368_s27, %s590_s17 }
  0x46   : > { %s112_s30 = sld [smem:[#allocation4 + %s111_s29]]  ;;  %s241_s6 = scalar_lea.vmem [#allocation2], %s477_s2 }
  0x47   : > { %v132_v30 = vstv %s116_s20  ;;  %s103_s2 = sadd.s32 1, %s477_s2  }
  0x48   : > { %v133_v31 = vmul.f32 %v132_v30, %v130_v28  ;;  %v134_v32 = vmul.f32 %v132_v30, %v131_v29  ;;  %v147_v35 = vstv %s124_s23  ;;  %p100_p10 = scmp.ge.s32.totalorder %s103_s2, 9  }
  0x49   : > { %v148_v36 = vmin.f32 %v572_v22, %v147_v35  ;;  %v149_v38 = vmin.f32 %v574_v23, %v147_v35  ;;  %s366_s7 = sld [smem:[#allocation6 + $0x1]] (%p100_p10)  ;;  %vm320_vm1 = vcmask (%p100_p10), 1041409   ;;  %vm323_vm2 = vcmask (%p100_p10), 1042434  }
  0x4a   : > { %v390_v33 = vcvt.f32.s32 %v133_v31  ;;  %v398_v34 = vcvt.f32.s32 %v134_v32  ;;  %v393_v44 = vand.u32 2147483648, %v133_v31  ;;  %v388_v46 = vand.u32 2147483647, %v133_v31 }
  0x4b   : > { %v150_v40 = vsub.f32 %v147_v35, %v148_v36  ;;  %v151_v41 = vsub.f32 %v147_v35, %v149_v38  ;;  %v401_v48 = vand.u32 2147483648, %v134_v32  ;;  %v396_v50 = vand.u32 2147483647, %v134_v32 }
  0x4c   : > { %v391_v37 = vcvt.s32.f32 %v390_v33  ;;  %v399_v39 = vcvt.s32.f32 %v398_v34  ;;  %vm612_vm6 = vcmp.lt.f32.partialorder %v388_v46, 8388608.0  ;;  %v158_v8 = vstv %s608_s1 }
  0x4d   : > { %v152_v42 = vmul.f32 1.442695, %v150_v40  ;;  %v153_v45 = vmul.f32 1.442695, %v151_v41  ;;  %vm397_vm7 = vcmp.lt.f32.partialorder %v396_v50, 8388608.0  ;;  %v139_v18 = vstv %s120_s28 }
  0x4e   : > { %v392_v43 = vand.u32 2147483647, %v391_v37  ;;  %v400_v47 = vand.u32 2147483647, %v399_v39  ;;  %v142_v28 = vstv %s112_s30  ;;  %vm335_vm5 = vcmask (%p100_p10), 1046534  }
  0x4f   : > { %v406_v49 = vcvt.f32.s32 %v152_v42  ;;  %v404_v51 = vand.u32 2147483647, %v152_v42  ;;  %v414_v52 = vcvt.f32.s32 %v153_v45  ;;  %v409_v54 = vand.u32 2147483648, %v152_v42 }
  0x50   : > { %v412_v55 = vand.u32 2147483647, %v153_v45  ;;  %v394_v56 = vor.u32 %v393_v44, %v392_v43  ;;  %v417_v58 = vand.u32 2147483648, %v153_v45  ;;  %v402_v60 = vor.u32 %v401_v48, %v400_v47 }
  0x51   : > { %v407_v53 = vcvt.s32.f32 %v406_v49  ;;  %v415_v57 = vcvt.s32.f32 %v414_v52  ;;  %vm405_vm8 = vcmp.lt.f32.partialorder %v404_v51, 8388608.0  ;;  %v299_v17 = vstv (%p100_p10), %s366_s7 }
  0x52   : > { %vm413_vm9 = vcmp.lt.f32.partialorder %v412_v55, 8388608.0  ;;  %v395_v1 = vsel %vm612_vm6, %v394_v56, %v133_v31  ;;  %v403_v6 = vsel %vm397_vm7, %v402_v60, %v134_v32  ;;  %441 = vrcp.f32 (%p100_p10), %v299_v17 }
  0x53   : > { %v408_v61 = vand.u32 2147483647, %v407_v53  ;;  %v416_v62 = vand.u32 2147483647, %v415_v57  ;;  %v137_v11 = vmax.f32 %v395_v1, 0.0  ;;  %v138_v13 = vmax.f32 %v403_v6, 0.0 }
  0x54   :  { %vm338_vm6 = vcmask (%p100_p10), 1047559   ;;  %vm342_vm7 = vcmask (%p100_p10), 7168  }
  0x55   : > { %v410_v63 = vor.u32 %v409_v54, %v408_v61  ;;  %v418_v2 = vor.u32 %v417_v58, %v416_v62  ;;  %v140_v24 = vmin.f32 %v139_v18, %v137_v11  ;;  %v141_v26 = vmin.f32 %v139_v18, %v138_v13 }
  0x57   : > { %v411_v7 = vsel %vm405_vm8, %v410_v63, %v152_v42  ;;  %v419_v9 = vsel %vm413_vm9, %v418_v2, %v153_v45  ;;  %v143_v31 = vmul.f32 %v142_v28, %v140_v24  ;;  %v144_v33 = vmul.f32 %v142_v28, %v141_v26  ;;  %v242_v63 = vld [vmem:[%s241_s6] sm:$0x1] }
  0x58   : > { %v156_v10 = vmax.f32 %v411_v7, 0.0  ;;  %v157_v12 = vmax.f32 %v419_v9, 0.0  ;;  %vm344_vm8 = vcmask (%p100_p10), 0  }
  0x59   : > { %v145_v38 = vadd.f32 %v143_v31, %v595_v27  ;;  %v146_v40 = vadd.f32 %v144_v33, %v595_v27 }
  0x5a   : > { %v159_v19 = vmin.f32 %v158_v8, %v156_v10  ;;  %v160_v20 = vmin.f32 %v158_v8, %v157_v12 }
  0x5c   : > { %v420_v21 = vtrunc.f32 %v159_v19  ;;  %v422_v25 = vtrunc.f32 %v160_v20 }
  0x5e   : > { %v421_v29 = vcvt.f32.s32 %v420_v21  ;;  %v423_v30 = vcvt.f32.s32 %v422_v25 }
  0x5f   :  { %v442_v22 = vpop.eup (%p100_p10), %441 }
  0x60   : > { %vm163_vm10 = vcmp.lt.s32.totalorder %v421_v29, 126  ;;  %vm165_vm11 = vcmp.lt.s32.totalorder %v423_v30, 126 }
  0x61   : > { %v164_v32 = vsel %vm163_vm10, %v421_v29, 126  ;;  %v166_v34 = vsel %vm165_vm11, %v423_v30, 126 }
  0x62   : > { %v167_v35 = vsub.s32 127, %v164_v32  ;;  %v168_v36 = vsub.s32 127, %v166_v34 }
  0x64   : > { %v169_v37 = vshll.u32 %v167_v35, 23  ;;  %v170_v39 = vshll.u32 %v168_v36, 23 }
  0x66   : > { %v173_v41 = vmul.f32 %v169_v37, %v595_v27  ;;  %v174_v42 = vmul.f32 %v170_v39, %v595_v27 }
  0x68   : > { %v175_v43 = vsel %vm96_vm3, %v173_v41, 0.0  ;;  %v176_v44 = vsel %vm97_vm4, %v174_v42, 0.0  ;;  %vm329_vm3 = vcmask (%p100_p10), 1044484   ;;  %vm332_vm4 = vcmask (%p100_p10), 1045509  }
  0x69   : > { %v179_v45 = vsel %vm177_vm12, %v145_v38, %v175_v43  ;;  %v180_v46 = vsel %vm178_vm13, %v146_v40, %v176_v44 }
  0x6a   : > { %v181_v47 = vsub.f32 %v179_v45, %v558_v14  ;;  %v182_v48 = vsub.f32 %v180_v46, %v560_v15 }
  0x6c   : > { %v183_v49 = vpack.c.bf16 %v182_v48, %v181_v47 }
  0x6e   : > { %385 = vmatmul.mubr.msk.bf16.vlgmr.msra.gmra.mxu0 %vm196_vm14, %v183_v49 }
 0x12e   : > { %v234_v50 = vpop.f32.mrf.mxu0 }
 0x12f   : > { %v243_v52 = vmul.f32 %v234_v50, %v234_v50 }
 0x130   : > { %v386_v51 = vpop.f32.mrf.mxu0 }
 0x131   : > { %v246_v55 = vsel %vm245_vm15, %v243_v52, 0.0 }
 0x132   : > { %v237_v27 = vpop.f32.mrf.mxu0 }
 0x133   : > { %v244_v53 = vmul.f32 %v237_v27, %v237_v27 }
 0x134   : > { %v387_v54 = vpop.f32.mrf.mxu0 }
 0x135   : > { %v247_v56 = vsel %vm245_vm15, %v244_v53, 0.0 }
 0x136   : > { %v248_v57 = vadd.f32 %v247_v56, %v246_v55 }
 0x138   : > { %v249_v58 = vrot.slane %v248_v57, 4 }
 0x13a   : > { %v250_v59 = vadd.f32 %v249_v58, %v248_v57 }
 0x13c   : > { %v251_v60 = vrot.slane %v250_v59, 2 }
 0x13e   : > { %v252_v61 = vadd.f32 %v251_v60, %v250_v59 }
 0x140   : > { %v253_v62 = vrot.slane %v252_v61, 1 }
 0x142   : > { %v254_v1 = vadd.f32 %v253_v62, %v252_v61  ;;  %102 = sbr.rel (!%p100_p10) target bundleno = 61 (0x3d), region = 64 }
 0x144   : > { %v255_v2 = vadd.f32 %v254_v1, %v242_v63 }
 0x146   : > { %257 = vst.msk [vmem:[%s241_s6] sm:$0x1] %vm51_vm0, %v255_v2 }
 0x14d   :  { %v263_v6 = vld [vmem:[#allocation2 + $0x1] sm:$0x1]  ;;  %v262_v7 = vld [vmem:[#allocation2] sm:$0x1]  ;;  %v264_v8 = vld [vmem:[#allocation2 + $0x2] sm:$0x1] }
 0x14e   :  { %v275_v9 = vsel %vm51_vm0, %v263_v6, 0.0  ;;  %v272_v10 = vsel %vm51_vm0, %v262_v7, 0.0  ;;  %v265_v11 = vld [vmem:[#allocation2 + $0x3] sm:$0x1]  ;;  %v278_v12 = vsel %vm51_vm0, %v264_v8, 0.0 }
 0x14f   :  { %276 = vadd.xlane.f32.xlu0 %v275_v9  ;;  %273 = vadd.xlane.f32.xlu1 %v272_v10  ;;  %v281_v13 = vsel %vm51_vm0, %v265_v11, 0.0  ;;  %v266_v18 = vld [vmem:[#allocation2 + $0x4] sm:$0x1]  ;;  %v267_v19 = vld [vmem:[#allocation2 + $0x5] sm:$0x1] }
 0x150   :  { %v284_v20 = vsel %vm51_vm0, %v266_v18, 0.0  ;;  %v287_v0 = vsel %vm51_vm0, %v267_v19, 0.0  ;;  %v268_v3 = vld [vmem:[#allocation2 + $0x6] sm:$0x1]  ;;  %v269_v4 = vld [vmem:[#allocation2 + $0x7] sm:$0x1] }
 0x151   :  { %v290_v5 = vsel %vm51_vm0, %v268_v3, 0.0  ;;  %v293_v14 = vsel %vm51_vm0, %v269_v4, 0.0  ;;  %v270_v15 = vld [vmem:[#allocation2 + $0x8] sm:$0x1] }
 0x152   :  { %v296_v16 = vsel %vm51_vm0, %v270_v15, 0.0  ;;  %vm326_vm0 = vcmask 1043459  }
 0x153   :  { %279 = vadd.xlane.f32.xlu0 %v278_v12  ;;  %282 = vadd.xlane.f32.xlu1 %v281_v13 }
 0x157   :  { %285 = vadd.xlane.f32.xlu0 %v284_v20  ;;  %288 = vadd.xlane.f32.xlu1 %v287_v0 }
 0x15b   :  { %291 = vadd.xlane.f32.xlu0 %v290_v5  ;;  %294 = vadd.xlane.f32.xlu1 %v293_v14 }
 0x15f   :  { %297 = vadd.xlane.f32.xlu0 %v296_v16 }
 0x1d8   :  { %v277_v23 = vpop.xlane.xlu0 %276  ;;  %v274_v21 = vpop.xlane.xlu1 %273 }
 0x1d9   :  { %v302_v24 = vmul.f32 %v442_v22, %v277_v23  ;;  %v301_v26 = vmul.f32 %v442_v22, %v274_v21 }
 0x1db   :  { %v319_v25 = vrot.slane %v302_v24, 7 }
 0x1dc   :  { %v280_v28 = vpop.xlane.xlu0 %279  ;;  %v283_v29 = vpop.xlane.xlu1 %282 }
 0x1dd   :  { %v303_v30 = vmul.f32 %v442_v22, %v280_v28  ;;  %v304_v31 = vmul.f32 %v442_v22, %v283_v29  ;;  %v321_v33 = vsel %vm320_vm1, %v319_v25, %v301_v26 }
 0x1df   :  { %v322_v32 = vrot.slane %v303_v30, 6  ;;  %v325_v34 = vrot.slane %v304_v31, 5 }
 0x1e0   :  { %v286_v35 = vpop.xlane.xlu0 %285  ;;  %v289_v36 = vpop.xlane.xlu1 %288 }
 0x1e1   :  { %v324_v37 = vsel %vm323_vm2, %v322_v32, %v321_v33  ;;  %v305_v38 = vmul.f32 %v442_v22, %v286_v35  ;;  %v306_v39 = vmul.f32 %v442_v22, %v289_v36 }
 0x1e2   :  { %v327_v41 = vsel %vm326_vm0, %v325_v34, %v324_v37 }
 0x1e3   :  { %v328_v40 = vrot.slane %v305_v38, 4  ;;  %v331_v42 = vrot.slane %v306_v39, 3 }
 0x1e4   :  { %v292_v43 = vpop.xlane.xlu0 %291  ;;  %v295_v44 = vpop.xlane.xlu1 %294 }
 0x1e5   :  { %v330_v45 = vsel %vm329_vm3, %v328_v40, %v327_v41  ;;  %v307_v46 = vmul.f32 %v442_v22, %v292_v43  ;;  %v308_v47 = vmul.f32 %v442_v22, %v295_v44 }
 0x1e6   :  { %v333_v50 = vsel %vm332_vm4, %v331_v42, %v330_v45 }
 0x1e7   :  { %v334_v48 = vrot.slane %v307_v46, 2  ;;  %v337_v49 = vrot.slane %v308_v47, 1 }
 0x1e8   :  { %v298_v51 = vpop.xlane.xlu0 %297 }
 0x1e9   :  { %v336_v52 = vsel %vm335_vm5, %v334_v48, %v333_v50  ;;  %v309_v27 = vmul.f32 %v442_v22, %v298_v51 }
 0x1ea   :  { %v339_v53 = vsel %vm338_vm6, %v337_v49, %v336_v52 }
 0x1eb   :  { %343 = vst.msk [vmem:[%s658_s5] sm:$0xff] %vm342_vm7, %v339_v53 }
 0x1ec   :  { %345 = vst.msk [vmem:[%s658_s5 + $0x8] sm:$0x1] %vm344_vm8, %v309_v27 }
 0x1ed   :  { %350 = vsyncpa [#allocation5], 1 }
 0x1ee   :  { %351 = vsyncpa [#allocation7], 1 }

</bundles_post_ra>
